<compile_context>
chip_gen: v7x
topology: tpu7x:2x2x1
jax: 0.10.0
libtpu: 0.0.40
codegen_flags: <defaults>
</compile_context>

<pallas_src>
import jax
import jax.numpy as jnp
from jax.experimental import pallas as pl
from jax.experimental.pallas import tpu as pltpu


def bilstm_kernel(x_ref, wih_ref, whf_ref, bfused_ref,
                  wfc_ref, bfc_ref,
                  out_ref,
                  xproj_ref):
    T = x_ref.shape[0]
    G4 = whf_ref.shape[1]          # 4*H  (gate order [i | f | g | o])
    H = G4 // 4

    # Hoisted, fused input projection for both directions, biases folded in:
    #   xproj[t, 0:4H]  = x[t] @ W_ih_fwd + (b_ih_fwd + b_hh_fwd)
    #   xproj[t, 4H:8H] = x[t] @ W_ih_bwd + (b_ih_bwd + b_hh_bwd)
    xproj_ref[...] = (jnp.dot(x_ref[...], wih_ref[...],
                              preferred_element_type=jnp.float32)
                      + bfused_ref[...])

    def act(gates):
        # Full-vreg transcendentals; sigmoid via the tanh identity so the
        # serial chain sees one EUP hop (+ cheap VPU scale/shift) instead of a
        # possible exp + reciprocal round trip.
        sig = 0.5 * jnp.tanh(0.5 * gates) + 0.5
        tg = jnp.tanh(gates)
        # Static lane slices per gate.  (Per review these compile to XLU
        # rotates; a fully lane-padded/rolled variant is a possible follow-up
        # once a bundle dump confirms the rotate churn dominates the step.)
        i = sig[:, 0:H]
        f = sig[:, H:2 * H]
        g = tg[:, 2 * H:3 * H]
        o = sig[:, 3 * H:4 * H]
        return i, f, g, o

    # ---------------- forward direction ----------------
    # t = 0 peeled: h == c == 0  =>  no h @ W_hh matmul, c = i*g.
    i, f, g, o = act(xproj_ref[0:1, 0:G4])
    c = i * g
    h = o * jnp.tanh(c)

    # Recurrent weight loaded once, reused across the unrolled steps.
    whh = whf_ref[...]

    # t = 1 .. T-1, fully unrolled (T is a static Python int).
    for t in range(1, T):
        gates = (xproj_ref[t:t + 1, 0:G4]
                 + jnp.dot(h, whh, preferred_element_type=jnp.float32))
        i, f, g, o = act(gates)
        c = f * c + i * g
        h = o * jnp.tanh(c)

    # ---------------- backward direction ----------------
    # Only outputs[-1] is consumed; for the reverse pass that is a single step
    # on x[T-1] from the zero initial state, so h @ W_hh_bwd is identically
    # zero and is dropped entirely.
    ib, fb, gb, ob = act(xproj_ref[T - 1:T, G4:2 * G4])
    cb = ib * gb
    hb = ob * jnp.tanh(cb)

    # FC head (dropout is identity at inference): single fused matmul on the
    # concatenated [h_fwd | h_bwd] against the lane-dense (2H, 128)-padded
    # W_fc, producing an unmasked (1, 128) store.
    hcat = jnp.concatenate([h, hb], axis=1)
    out_ref[...] = (jnp.dot(hcat, wfc_ref[...],
                            preferred_element_type=jnp.float32)
                    + bfc_ref[...])


def bilstm_forward(x_tm, params):
    """x_tm: (T, n_input) time-major, batch squeezed (batch must be 1)."""
    T, NI = x_tm.shape
    H = params["whf"].shape[0]
    NC = params["wfc"].shape[1]
    NC_PAD = max(128, ((NC + 127) // 128) * 128)   # lane-dense output width

    # Fuse forward/backward input projections and fold in the biases.
    wih_fused = jnp.concatenate([params["wif"], params["wib"]], axis=1)  # (NI, 8H)
    b_fused = jnp.concatenate([params["bf"], params["bb"]]).reshape(1, 8 * H)

    # Lane-dense FC head: zero-pad the output (class) dimension to 128 lanes.
    wfc_pad = jnp.pad(params["wfc"], ((0, 0), (0, NC_PAD - NC)))          # (2H, 128)
    bfc_pad = jnp.pad(params["bfc"], (0, NC_PAD - NC)).reshape(1, NC_PAD)  # (1, 128)

    vmem = pl.BlockSpec(memory_space=pltpu.MemorySpace.VMEM)

    out_pad = pl.pallas_call(
        bilstm_kernel,
        out_shape=jax.ShapeDtypeStruct((1, NC_PAD), jnp.float32),
        in_specs=[vmem] * 6,
        out_specs=vmem,
        scratch_shapes=[
            pltpu.VMEM((T, 8 * H), jnp.float32),   # hoisted input projections
        ],
    )(x_tm, wih_fused, params["whf"], b_fused, wfc_pad, bfc_pad)

    return out_pad[:, :NC]


def init_params(key, n_input, n_hidden, n_classes):
    """Deterministic synthetic init mirroring PyTorch shapes (weights stored transposed)."""
    ks = jax.random.split(key, 12)
    klstm = 1.0 / jnp.sqrt(jnp.float32(n_hidden))
    kfc = 1.0 / jnp.sqrt(jnp.float32(2 * n_hidden))

    def u(k, shape, bound):
        return jax.random.uniform(k, shape, jnp.float32, -bound, bound)

    def bias_with_forget_one(k):
        b = u(k, (4 * n_hidden,), klstm)
        # PyTorch module sets bias[n//4 : n//2] = 1.0 (forget gate) on BOTH b_ih, b_hh.
        return b.at[n_hidden:2 * n_hidden].set(1.0)

    wif = u(ks[0], (n_input, 4 * n_hidden), klstm)
    whf = u(ks[1], (n_hidden, 4 * n_hidden), klstm)
    bf = bias_with_forget_one(ks[2]) + bias_with_forget_one(ks[3])

    wib = u(ks[4], (n_input, 4 * n_hidden), klstm)
    whb = u(ks[5], (n_hidden, 4 * n_hidden), klstm)
    bb = bias_with_forget_one(ks[6]) + bias_with_forget_one(ks[7])

    wfc = u(ks[8], (2 * n_hidden, n_classes), kfc)
    bfc = u(ks[9], (n_classes,), kfc)

    return dict(wif=wif, whf=whf, bf=bf, wib=wib, whb=whb, bb=bb,
                wfc=wfc, bfc=bfc)


def reference_forward(x_tm, p):
    """Pure-JAX reference of the same forward pass (for correctness check)."""
    T = x_tm.shape[0]
    H = p["whf"].shape[0]

    def cell(x_t, h, c, w_ih, w_hh, b):
        gates = x_t @ w_ih + h @ w_hh + b
        i = jax.nn.sigmoid(gates[0 * H:1 * H])
        f = jax.nn.sigmoid(gates[1 * H:2 * H])
        g = jnp.tanh(gates[2 * H:3 * H])
        o = jax.nn.sigmoid(gates[3 * H:4 * H])
        c = f * c + i * g
        h = o * jnp.tanh(c)
        return h, c

    hf = jnp.zeros((H,), jnp.float32)
    cf = jnp.zeros((H,), jnp.float32)
    for t in range(T):
        hf, cf = cell(x_tm[t], hf, cf, p["wif"], p["whf"], p["bf"])
    hb, _ = cell(x_tm[T - 1], jnp.zeros((H,), jnp.float32),
                 jnp.zeros((H,), jnp.float32), p["wib"], p["whb"], p["bb"])
    out_last = jnp.concatenate([hf, hb])
    return (out_last @ p["wfc"] + p["bfc"]).reshape(1, -1)


if __name__ == "__main__":
    # small shapes implied by the module: batch=1 (required by .view(1, n_classes)),
    # seq=8, n_input=16, n_hidden=32, n_classes=10
    T, N_INPUT, N_HIDDEN, N_CLASSES = 8, 16, 32, 10

    key = jax.random.PRNGKey(0)
    kx, kp = jax.random.split(key)

    # module input (batch, seq, n_input); permute(1,0,2) + squeeze batch -> (T, n_input)
    x = jax.random.normal(kx, (1, T, N_INPUT), jnp.float32)
    x_tm = jnp.transpose(x, (1, 0, 2))[:, 0, :]

    params = init_params(kp, N_INPUT, N_HIDDEN, N_CLASSES)

    out = bilstm_forward(x_tm, params)
    out = jax.block_until_ready(out)

    ref = reference_forward(x_tm, params)
    assert out.shape == (1, N_CLASSES)
    assert jnp.allclose(out, ref, rtol=1e-3, atol=1e-3), (out, ref)

    print("KERNEL_OK")
</pallas_src>

<mosaic_0001>
module attributes {stable_mosaic.version = 11 : i64} {
  func.func @bilstm_kernel(%arg0: memref<8x16xf32, #tpu.memory_space<vmem>>, %arg1: memref<16x256xf32, #tpu.memory_space<vmem>>, %arg2: memref<32x128xf32, #tpu.memory_space<vmem>>, %arg3: memref<1x256xf32, #tpu.memory_space<vmem>>, %arg4: memref<64x128xf32, #tpu.memory_space<vmem>>, %arg5: memref<1x128xf32, #tpu.memory_space<vmem>>, %arg6: memref<1x128xf32, #tpu.memory_space<vmem>>, %arg7: memref<8x256xf32, #tpu.memory_space<vmem>>) attributes {dimension_semantics = [], scalar_prefetch = 0 : i64, scratch_operands = 1 : i64, tpu.core_type = #tpu.core_type<tc>} {
    %c0 = arith.constant 0 : index
    %c0_0 = arith.constant 0 : index
    %0 = vector.load %arg0[%c0, %c0_0] : memref<8x16xf32, #tpu.memory_space<vmem>>, vector<8x16xf32>
    %c0_1 = arith.constant 0 : index
    %c0_2 = arith.constant 0 : index
    %1 = vector.load %arg1[%c0_1, %c0_2] : memref<16x256xf32, #tpu.memory_space<vmem>>, vector<16x256xf32>
    %cst = arith.constant dense<0.000000e+00> : vector<8x256xf32>
    %2 = tpu.matmul %0, %1, %cst {dimension_numbers = #tpu.dot_dimension_numbers<[1], [0], [0], [1], [0, 0, 1, 1], [], []>} : vector<8x16xf32>, vector<16x256xf32>, vector<8x256xf32> -> vector<8x256xf32>
    %c0_3 = arith.constant 0 : index
    %c0_4 = arith.constant 0 : index
    %3 = vector.load %arg3[%c0_3, %c0_4] : memref<1x256xf32, #tpu.memory_space<vmem>>, vector<1x256xf32>
    %4 = vector.broadcast %3 : vector<1x256xf32> to vector<8x256xf32>
    %5 = arith.addf %2, %4 : vector<8x256xf32>
    %c0_5 = arith.constant 0 : index
    %c0_6 = arith.constant 0 : index
    %6 = vector.load %arg7[%c0_5, %c0_6] : memref<8x256xf32, #tpu.memory_space<vmem>>, vector<8x256xf32>
    tpu.vector_store %arg7[%c0_5, %c0_6], %5 {strides = array<i32>} : memref<8x256xf32, #tpu.memory_space<vmem>>, vector<8x256xf32>,
    %c0_7 = arith.constant 0 : index
    %c0_8 = arith.constant 0 : index
    %7 = vector.load %arg7[%c0_7, %c0_8] : memref<8x256xf32, #tpu.memory_space<vmem>>, vector<1x128xf32>
    %cst_9 = arith.constant 5.000000e-01 : f32
    %8 = vector.broadcast %cst_9 : f32 to vector<1x128xf32>
    %9 = arith.mulf %8, %7 : vector<1x128xf32>
    %10 = math.tanh %9 : vector<1x128xf32>
    %cst_10 = arith.constant 5.000000e-01 : f32
    %11 = vector.broadcast %cst_10 : f32 to vector<1x128xf32>
    %12 = arith.mulf %11, %10 : vector<1x128xf32>
    %cst_11 = arith.constant 5.000000e-01 : f32
    %13 = vector.broadcast %cst_11 : f32 to vector<1x128xf32>
    %14 = arith.addf %12, %13 : vector<1x128xf32>
    %15 = math.tanh %7 : vector<1x128xf32>
    %16 = vector.extract_strided_slice %14 {offsets = [0, 0], sizes = [1, 32], strides = [1, 1]} : vector<1x128xf32> to vector<1x32xf32>
    %17 = vector.extract_strided_slice %15 {offsets = [0, 64], sizes = [1, 32], strides = [1, 1]} : vector<1x128xf32> to vector<1x32xf32>
    %18 = vector.extract_strided_slice %14 {offsets = [0, 96], sizes = [1, 32], strides = [1, 1]} : vector<1x128xf32> to vector<1x32xf32>
    %19 = arith.mulf %16, %17 : vector<1x32xf32>
    %20 = math.tanh %19 : vector<1x32xf32>
    %21 = arith.mulf %18, %20 : vector<1x32xf32>
    %c0_12 = arith.constant 0 : index
    %c0_13 = arith.constant 0 : index
    %22 = vector.load %arg2[%c0_12, %c0_13] : memref<32x128xf32, #tpu.memory_space<vmem>>, vector<32x128xf32>
    %c1 = arith.constant 1 : index
    %c0_14 = arith.constant 0 : index
    %23 = vector.load %arg7[%c1, %c0_14] : memref<8x256xf32, #tpu.memory_space<vmem>>, vector<1x128xf32>
    %cst_15 = arith.constant dense<0.000000e+00> : vector<1x128xf32>
    %24 = tpu.matmul %21, %22, %cst_15 {dimension_numbers = #tpu.dot_dimension_numbers<[1], [0], [0], [1], [0, 0, 1, 1], [], []>} : vector<1x32xf32>, vector<32x128xf32>, vector<1x128xf32> -> vector<1x128xf32>
    %25 = arith.addf %23, %24 : vector<1x128xf32>
    %cst_16 = arith.constant 5.000000e-01 : f32
    %26 = vector.broadcast %cst_16 : f32 to vector<1x128xf32>
    %27 = arith.mulf %26, %25 : vector<1x128xf32>
    %28 = math.tanh %27 : vector<1x128xf32>
    %cst_17 = arith.constant 5.000000e-01 : f32
    %29 = vector.broadcast %cst_17 : f32 to vector<1x128xf32>
    %30 = arith.mulf %29, %28 : vector<1x128xf32>
    %cst_18 = arith.constant 5.000000e-01 : f32
    %31 = vector.broadcast %cst_18 : f32 to vector<1x128xf32>
    %32 = arith.addf %30, %31 : vector<1x128xf32>
    %33 = math.tanh %25 : vector<1x128xf32>
    %34 = vector.extract_strided_slice %32 {offsets = [0, 0], sizes = [1, 32], strides = [1, 1]} : vector<1x128xf32> to vector<1x32xf32>
    %35 = vector.extract_strided_slice %32 {offsets = [0, 32], sizes = [1, 32], strides = [1, 1]} : vector<1x128xf32> to vector<1x32xf32>
    %36 = vector.extract_strided_slice %33 {offsets = [0, 64], sizes = [1, 32], strides = [1, 1]} : vector<1x128xf32> to vector<1x32xf32>
    %37 = vector.extract_strided_slice %32 {offsets = [0, 96], sizes = [1, 32], strides = [1, 1]} : vector<1x128xf32> to vector<1x32xf32>
    %38 = arith.mulf %35, %19 : vector<1x32xf32>
    %39 = arith.mulf %34, %36 : vector<1x32xf32>
    %40 = arith.addf %38, %39 : vector<1x32xf32>
    %41 = math.tanh %40 : vector<1x32xf32>
    %42 = arith.mulf %37, %41 : vector<1x32xf32>
    %c2 = arith.constant 2 : index
    %c0_19 = arith.constant 0 : index
    %43 = vector.load %arg7[%c2, %c0_19] : memref<8x256xf32, #tpu.memory_space<vmem>>, vector<1x128xf32>
    %cst_20 = arith.constant dense<0.000000e+00> : vector<1x128xf32>
    %44 = tpu.matmul %42, %22, %cst_20 {dimension_numbers = #tpu.dot_dimension_numbers<[1], [0], [0], [1], [0, 0, 1, 1], [], []>} : vector<1x32xf32>, vector<32x128xf32>, vector<1x128xf32> -> vector<1x128xf32>
    %45 = arith.addf %43, %44 : vector<1x128xf32>
    %cst_21 = arith.constant 5.000000e-01 : f32
    %46 = vector.broadcast %cst_21 : f32 to vector<1x128xf32>
    %47 = arith.mulf %46, %45 : vector<1x128xf32>
    %48 = math.tanh %47 : vector<1x128xf32>
    %cst_22 = arith.constant 5.000000e-01 : f32
    %49 = vector.broadcast %cst_22 : f32 to vector<1x128xf32>
    %50 = arith.mulf %49, %48 : vector<1x128xf32>
    %cst_23 = arith.constant 5.000000e-01 : f32
    %51 = vector.broadcast %cst_23 : f32 to vector<1x128xf32>
    %52 = arith.addf %50, %51 : vector<1x128xf32>
    %53 = math.tanh %45 : vector<1x128xf32>
    %54 = vector.extract_strided_slice %52 {offsets = [0, 0], sizes = [1, 32], strides = [1, 1]} : vector<1x128xf32> to vector<1x32xf32>
    %55 = vector.extract_strided_slice %52 {offsets = [0, 32], sizes = [1, 32], strides = [1, 1]} : vector<1x128xf32> to vector<1x32xf32>
    %56 = vector.extract_strided_slice %53 {offsets = [0, 64], sizes = [1, 32], strides = [1, 1]} : vector<1x128xf32> to vector<1x32xf32>
    %57 = vector.extract_strided_slice %52 {offsets = [0, 96], sizes = [1, 32], strides = [1, 1]} : vector<1x128xf32> to vector<1x32xf32>
    %58 = arith.mulf %55, %40 : vector<1x32xf32>
    %59 = arith.mulf %54, %56 : vector<1x32xf32>
    %60 = arith.addf %58, %59 : vector<1x32xf32>
    %61 = math.tanh %60 : vector<1x32xf32>
    %62 = arith.mulf %57, %61 : vector<1x32xf32>
    %c3 = arith.constant 3 : index
    %c0_24 = arith.constant 0 : index
    %63 = vector.load %arg7[%c3, %c0_24] : memref<8x256xf32, #tpu.memory_space<vmem>>, vector<1x128xf32>
    %cst_25 = arith.constant dense<0.000000e+00> : vector<1x128xf32>
    %64 = tpu.matmul %62, %22, %cst_25 {dimension_numbers = #tpu.dot_dimension_numbers<[1], [0], [0], [1], [0, 0, 1, 1], [], []>} : vector<1x32xf32>, vector<32x128xf32>, vector<1x128xf32> -> vector<1x128xf32>
    %65 = arith.addf %63, %64 : vector<1x128xf32>
    %cst_26 = arith.constant 5.000000e-01 : f32
    %66 = vector.broadcast %cst_26 : f32 to vector<1x128xf32>
    %67 = arith.mulf %66, %65 : vector<1x128xf32>
    %68 = math.tanh %67 : vector<1x128xf32>
    %cst_27 = arith.constant 5.000000e-01 : f32
    %69 = vector.broadcast %cst_27 : f32 to vector<1x128xf32>
    %70 = arith.mulf %69, %68 : vector<1x128xf32>
    %cst_28 = arith.constant 5.000000e-01 : f32
    %71 = vector.broadcast %cst_28 : f32 to vector<1x128xf32>
    %72 = arith.addf %70, %71 : vector<1x128xf32>
    %73 = math.tanh %65 : vector<1x128xf32>
    %74 = vector.extract_strided_slice %72 {offsets = [0, 0], sizes = [1, 32], strides = [1, 1]} : vector<1x128xf32> to vector<1x32xf32>
    %75 = vector.extract_strided_slice %72 {offsets = [0, 32], sizes = [1, 32], strides = [1, 1]} : vector<1x128xf32> to vector<1x32xf32>
    %76 = vector.extract_strided_slice %73 {offsets = [0, 64], sizes = [1, 32], strides = [1, 1]} : vector<1x128xf32> to vector<1x32xf32>
    %77 = vector.extract_strided_slice %72 {offsets = [0, 96], sizes = [1, 32], strides = [1, 1]} : vector<1x128xf32> to vector<1x32xf32>
    %78 = arith.mulf %75, %60 : vector<1x32xf32>
    %79 = arith.mulf %74, %76 : vector<1x32xf32>
    %80 = arith.addf %78, %79 : vector<1x32xf32>
    %81 = math.tanh %80 : vector<1x32xf32>
    %82 = arith.mulf %77, %81 : vector<1x32xf32>
    %c4 = arith.constant 4 : index
    %c0_29 = arith.constant 0 : index
    %83 = vector.load %arg7[%c4, %c0_29] : memref<8x256xf32, #tpu.memory_space<vmem>>, vector<1x128xf32>
    %cst_30 = arith.constant dense<0.000000e+00> : vector<1x128xf32>
    %84 = tpu.matmul %82, %22, %cst_30 {dimension_numbers = #tpu.dot_dimension_numbers<[1], [0], [0], [1], [0, 0, 1, 1], [], []>} : vector<1x32xf32>, vector<32x128xf32>, vector<1x128xf32> -> vector<1x128xf32>
    %85 = arith.addf %83, %84 : vector<1x128xf32>
    %cst_31 = arith.constant 5.000000e-01 : f32
    %86 = vector.broadcast %cst_31 : f32 to vector<1x128xf32>
    %87 = arith.mulf %86, %85 : vector<1x128xf32>
    %88 = math.tanh %87 : vector<1x128xf32>
    %cst_32 = arith.constant 5.000000e-01 : f32
    %89 = vector.broadcast %cst_32 : f32 to vector<1x128xf32>
    %90 = arith.mulf %89, %88 : vector<1x128xf32>
    %cst_33 = arith.constant 5.000000e-01 : f32
    %91 = vector.broadcast %cst_33 : f32 to vector<1x128xf32>
    %92 = arith.addf %90, %91 : vector<1x128xf32>
    %93 = math.tanh %85 : vector<1x128xf32>
    %94 = vector.extract_strided_slice %92 {offsets = [0, 0], sizes = [1, 32], strides = [1, 1]} : vector<1x128xf32> to vector<1x32xf32>
    %95 = vector.extract_strided_slice %92 {offsets = [0, 32], sizes = [1, 32], strides = [1, 1]} : vector<1x128xf32> to vector<1x32xf32>
    %96 = vector.extract_strided_slice %93 {offsets = [0, 64], sizes = [1, 32], strides = [1, 1]} : vector<1x128xf32> to vector<1x32xf32>
    %97 = vector.extract_strided_slice %92 {offsets = [0, 96], sizes = [1, 32], strides = [1, 1]} : vector<1x128xf32> to vector<1x32xf32>
    %98 = arith.mulf %95, %80 : vector<1x32xf32>
    %99 = arith.mulf %94, %96 : vector<1x32xf32>
    %100 = arith.addf %98, %99 : vector<1x32xf32>
    %101 = math.tanh %100 : vector<1x32xf32>
    %102 = arith.mulf %97, %101 : vector<1x32xf32>
    %c5 = arith.constant 5 : index
    %c0_34 = arith.constant 0 : index
    %103 = vector.load %arg7[%c5, %c0_34] : memref<8x256xf32, #tpu.memory_space<vmem>>, vector<1x128xf32>
    %cst_35 = arith.constant dense<0.000000e+00> : vector<1x128xf32>
    %104 = tpu.matmul %102, %22, %cst_35 {dimension_numbers = #tpu.dot_dimension_numbers<[1], [0], [0], [1], [0, 0, 1, 1], [], []>} : vector<1x32xf32>, vector<32x128xf32>, vector<1x128xf32> -> vector<1x128xf32>
    %105 = arith.addf %103, %104 : vector<1x128xf32>
    %cst_36 = arith.constant 5.000000e-01 : f32
    %106 = vector.broadcast %cst_36 : f32 to vector<1x128xf32>
    %107 = arith.mulf %106, %105 : vector<1x128xf32>
    %108 = math.tanh %107 : vector<1x128xf32>
    %cst_37 = arith.constant 5.000000e-01 : f32
    %109 = vector.broadcast %cst_37 : f32 to vector<1x128xf32>
    %110 = arith.mulf %109, %108 : vector<1x128xf32>
    %cst_38 = arith.constant 5.000000e-01 : f32
    %111 = vector.broadcast %cst_38 : f32 to vector<1x128xf32>
    %112 = arith.addf %110, %111 : vector<1x128xf32>
    %113 = math.tanh %105 : vector<1x128xf32>
    %114 = vector.extract_strided_slice %112 {offsets = [0, 0], sizes = [1, 32], strides = [1, 1]} : vector<1x128xf32> to vector<1x32xf32>
    %115 = vector.extract_strided_slice %112 {offsets = [0, 32], sizes = [1, 32], strides = [1, 1]} : vector<1x128xf32> to vector<1x32xf32>
    %116 = vector.extract_strided_slice %113 {offsets = [0, 64], sizes = [1, 32], strides = [1, 1]} : vector<1x128xf32> to vector<1x32xf32>
    %117 = vector.extract_strided_slice %112 {offsets = [0, 96], sizes = [1, 32], strides = [1, 1]} : vector<1x128xf32> to vector<1x32xf32>
    %118 = arith.mulf %115, %100 : vector<1x32xf32>
    %119 = arith.mulf %114, %116 : vector<1x32xf32>
    %120 = arith.addf %118, %119 : vector<1x32xf32>
    %121 = math.tanh %120 : vector<1x32xf32>
    %122 = arith.mulf %117, %121 : vector<1x32xf32>
    %c6 = arith.constant 6 : index
    %c0_39 = arith.constant 0 : index
    %123 = vector.load %arg7[%c6, %c0_39] : memref<8x256xf32, #tpu.memory_space<vmem>>, vector<1x128xf32>
    %cst_40 = arith.constant dense<0.000000e+00> : vector<1x128xf32>
    %124 = tpu.matmul %122, %22, %cst_40 {dimension_numbers = #tpu.dot_dimension_numbers<[1], [0], [0], [1], [0, 0, 1, 1], [], []>} : vector<1x32xf32>, vector<32x128xf32>, vector<1x128xf32> -> vector<1x128xf32>
    %125 = arith.addf %123, %124 : vector<1x128xf32>
    %cst_41 = arith.constant 5.000000e-01 : f32
    %126 = vector.broadcast %cst_41 : f32 to vector<1x128xf32>
    %127 = arith.mulf %126, %125 : vector<1x128xf32>
    %128 = math.tanh %127 : vector<1x128xf32>
    %cst_42 = arith.constant 5.000000e-01 : f32
    %129 = vector.broadcast %cst_42 : f32 to vector<1x128xf32>
    %130 = arith.mulf %129, %128 : vector<1x128xf32>
    %cst_43 = arith.constant 5.000000e-01 : f32
    %131 = vector.broadcast %cst_43 : f32 to vector<1x128xf32>
    %132 = arith.addf %130, %131 : vector<1x128xf32>
    %133 = math.tanh %125 : vector<1x128xf32>
    %134 = vector.extract_strided_slice %132 {offsets = [0, 0], sizes = [1, 32], strides = [1, 1]} : vector<1x128xf32> to vector<1x32xf32>
    %135 = vector.extract_strided_slice %132 {offsets = [0, 32], sizes = [1, 32], strides = [1, 1]} : vector<1x128xf32> to vector<1x32xf32>
    %136 = vector.extract_strided_slice %133 {offsets = [0, 64], sizes = [1, 32], strides = [1, 1]} : vector<1x128xf32> to vector<1x32xf32>
    %137 = vector.extract_strided_slice %132 {offsets = [0, 96], sizes = [1, 32], strides = [1, 1]} : vector<1x128xf32> to vector<1x32xf32>
    %138 = arith.mulf %135, %120 : vector<1x32xf32>
    %139 = arith.mulf %134, %136 : vector<1x32xf32>
    %140 = arith.addf %138, %139 : vector<1x32xf32>
    %141 = math.tanh %140 : vector<1x32xf32>
    %142 = arith.mulf %137, %141 : vector<1x32xf32>
    %c7 = arith.constant 7 : index
    %c0_44 = arith.constant 0 : index
    %143 = vector.load %arg7[%c7, %c0_44] : memref<8x256xf32, #tpu.memory_space<vmem>>, vector<1x128xf32>
    %cst_45 = arith.constant dense<0.000000e+00> : vector<1x128xf32>
    %144 = tpu.matmul %142, %22, %cst_45 {dimension_numbers = #tpu.dot_dimension_numbers<[1], [0], [0], [1], [0, 0, 1, 1], [], []>} : vector<1x32xf32>, vector<32x128xf32>, vector<1x128xf32> -> vector<1x128xf32>
    %145 = arith.addf %143, %144 : vector<1x128xf32>
    %cst_46 = arith.constant 5.000000e-01 : f32
    %146 = vector.broadcast %cst_46 : f32 to vector<1x128xf32>
    %147 = arith.mulf %146, %145 : vector<1x128xf32>
    %148 = math.tanh %147 : vector<1x128xf32>
    %cst_47 = arith.constant 5.000000e-01 : f32
    %149 = vector.broadcast %cst_47 : f32 to vector<1x128xf32>
    %150 = arith.mulf %149, %148 : vector<1x128xf32>
    %cst_48 = arith.constant 5.000000e-01 : f32
    %151 = vector.broadcast %cst_48 : f32 to vector<1x128xf32>
    %152 = arith.addf %150, %151 : vector<1x128xf32>
    %153 = math.tanh %145 : vector<1x128xf32>
    %154 = vector.extract_strided_slice %152 {offsets = [0, 0], sizes = [1, 32], strides = [1, 1]} : vector<1x128xf32> to vector<1x32xf32>
    %155 = vector.extract_strided_slice %152 {offsets = [0, 32], sizes = [1, 32], strides = [1, 1]} : vector<1x128xf32> to vector<1x32xf32>
    %156 = vector.extract_strided_slice %153 {offsets = [0, 64], sizes = [1, 32], strides = [1, 1]} : vector<1x128xf32> to vector<1x32xf32>
    %157 = vector.extract_strided_slice %152 {offsets = [0, 96], sizes = [1, 32], strides = [1, 1]} : vector<1x128xf32> to vector<1x32xf32>
    %158 = arith.mulf %155, %140 : vector<1x32xf32>
    %159 = arith.mulf %154, %156 : vector<1x32xf32>
    %160 = arith.addf %158, %159 : vector<1x32xf32>
    %161 = math.tanh %160 : vector<1x32xf32>
    %162 = arith.mulf %157, %161 : vector<1x32xf32>
    %c7_49 = arith.constant 7 : index
    %c128 = arith.constant 128 : index
    %163 = vector.load %arg7[%c7_49, %c128] : memref<8x256xf32, #tpu.memory_space<vmem>>, vector<1x128xf32>
    %cst_50 = arith.constant 5.000000e-01 : f32
    %164 = vector.broadcast %cst_50 : f32 to vector<1x128xf32>
    %165 = arith.mulf %164, %163 : vector<1x128xf32>
    %166 = math.tanh %165 : vector<1x128xf32>
    %cst_51 = arith.constant 5.000000e-01 : f32
    %167 = vector.broadcast %cst_51 : f32 to vector<1x128xf32>
    %168 = arith.mulf %167, %166 : vector<1x128xf32>
    %cst_52 = arith.constant 5.000000e-01 : f32
    %169 = vector.broadcast %cst_52 : f32 to vector<1x128xf32>
    %170 = arith.addf %168, %169 : vector<1x128xf32>
    %171 = math.tanh %163 : vector<1x128xf32>
    %172 = vector.extract_strided_slice %170 {offsets = [0, 0], sizes = [1, 32], strides = [1, 1]} : vector<1x128xf32> to vector<1x32xf32>
    %173 = vector.extract_strided_slice %171 {offsets = [0, 64], sizes = [1, 32], strides = [1, 1]} : vector<1x128xf32> to vector<1x32xf32>
    %174 = vector.extract_strided_slice %170 {offsets = [0, 96], sizes = [1, 32], strides = [1, 1]} : vector<1x128xf32> to vector<1x32xf32>
    %175 = arith.mulf %172, %173 : vector<1x32xf32>
    %176 = math.tanh %175 : vector<1x32xf32>
    %177 = arith.mulf %174, %176 : vector<1x32xf32>
    %178 = tpu.concatenate %162, %177 in 1 : vector<1x32xf32>, vector<1x32xf32> -> vector<1x64xf32>
    %c0_53 = arith.constant 0 : index
    %c0_54 = arith.constant 0 : index
    %179 = vector.load %arg4[%c0_53, %c0_54] : memref<64x128xf32, #tpu.memory_space<vmem>>, vector<64x128xf32>
    %cst_55 = arith.constant dense<0.000000e+00> : vector<1x128xf32>
    %180 = tpu.matmul %178, %179, %cst_55 {dimension_numbers = #tpu.dot_dimension_numbers<[1], [0], [0], [1], [0, 0, 1, 1], [], []>} : vector<1x64xf32>, vector<64x128xf32>, vector<1x128xf32> -> vector<1x128xf32>
    %c0_56 = arith.constant 0 : index
    %c0_57 = arith.constant 0 : index
    %181 = vector.load %arg5[%c0_56, %c0_57] : memref<1x128xf32, #tpu.memory_space<vmem>>, vector<1x128xf32>
    %182 = arith.addf %180, %181 : vector<1x128xf32>
    %c0_58 = arith.constant 0 : index
    %c0_59 = arith.constant 0 : index
    %183 = vector.load %arg6[%c0_58, %c0_59] : memref<1x128xf32, #tpu.memory_space<vmem>>, vector<1x128xf32>
    tpu.vector_store %arg6[%c0_58, %c0_59], %182 {strides = array<i32>} : memref<1x128xf32, #tpu.memory_space<vmem>>, vector<1x128xf32>,
    return
  }
}

</mosaic_0001>

<bundles_post_ra>
// kernel: tpu_custom_call.1
= control target key start
LH: loop header
LB: loop body
LE: loop exit
PB: predicated region body
PF: predicated region fallthrough
CT: control target
= control target key end

     0   :  { %11 = vsyncpa [#allocation4], 0  ;;  %s1623_s0 = inlined_call_operand.hbm [shape: f32[8,16], index: 0, kind: input, shape index: {}]   ;;  %s1624_s1 = inlined_call_operand.hbm [shape: f32[16,256], index: 1, kind: input, shape index: {}]   ;;  %s1625_s2 = inlined_call_operand.hbm [shape: f32[32,128], index: 2, kind: input, shape index: {}]   ;;  %s1626_s3 = inlined_call_operand.vmem [shape: f32[1,256], index: 3, kind: input, shape index: {}]   ;;  %s1627_s4 = inlined_call_operand.hbm [shape: f32[64,128], index: 4, kind: input, shape index: {}]   ;;  %s1628_s5 = inlined_call_operand.vmem [shape: f32[1,128], index: 5, kind: input, shape index: {}]   ;;  %s1629_s6 = inlined_call_operand.hbm [shape: f32[1,128], index: 6, kind: output, shape index: {}]  }
   0x1   :  { %12 = vsyncpa [#allocation7], 0 }
   0x2   :  { %13 = vsyncpa [#allocation10], 0 }
   0x3   :  { %14 = vsyncpa [#allocation5], 0  ;;  %s1411_s21 = smov [#allocation6]   ;;  %s1293_s25 = scalar_lea.hbm %s1624_s1, 512 }
   0x4   :  { %s30_s22 = sshll.u32 %s1411_s21, 4  ;;  %p1294_p0 = scmp.ne.s32.totalorder %s1624_s1, %s1293_s25  ;;  %s31_s22 = int_to_ptr.vmem [resolvable:$true] %s30_s22 }
   0x5   :  { %p1297_p1 = scmp.lt.u32.totalorder %s1293_s25, %s1624_s1 }
   0x7   :  { %p1299_p2 = pnand %p1297_p1, %p1294_p0 }
   0x9   :  { %1302 = shalt.err (!%p1299_p2)
}
   0xa   :  { %s1303_s30 = scalar_lea.vmem %s31_s22, 512  ;;  %p1308_p4 = scmp.lt.s32.totalorder %s31_s22, %s31_s22 }
   0xb   :  { %p1304_p3 = scmp.ne.s32.totalorder %s31_s22, %s1303_s30  ;;  %p1309_p5 = scmp.lt.s32.totalorder %s1303_s30, %s1303_s30 }
   0xd   :  { %p1310_p6 = por %p1309_p5, %p1308_p4 }
   0xf   :  { %p1311_p7 = pnand %p1310_p6, %p1304_p3 }
  0x11   :  { %1314 = shalt.err (!%p1311_p7)
}
  0x12   :  { %s1412_s7 = smov 256   ;;  %s1413_s8 = smov 16  }
  0x13   :  { %36 = dma.hbm_to_vmem [thread:$0]  %s1624_s1, 512, %s31_s22, [#allocation7], %s1412_s7, %s1412_s7, %s1413_s8  }
  0x14   :  { %s1414_s11 = smov [#allocation3]   ;;  %s1415_s13 = smov [#allocation8]  }
  0x15   :  { %s21_s12 = sshll.u32 %s1414_s11, 4  ;;  %s42_s14 = sshll.u32 %s1415_s13, 4  ;;  %s22_s12 = int_to_ptr.vmem [resolvable:$true] %s21_s12  ;;  %s43_s14 = int_to_ptr.vmem [resolvable:$true] %s42_s14 }
  0x16   :  { %s1315_s17 = scalar_lea.hbm %s1623_s0, 128 }
  0x17   :  { %p1316_p8 = scmp.ne.s32.totalorder %s1623_s0, %s1315_s17  ;;  %p1319_p9 = scmp.lt.u32.totalorder %s1315_s17, %s1623_s0 }
  0x19   :  { %p1321_p10 = pnand %p1319_p9, %p1316_p8 }
  0x1b   :  { %1324 = shalt.err (!%p1321_p10)
}
  0x1c   :  { %s1325_s1 = scalar_lea.vmem %s22_s12, 128  ;;  %p1330_p12 = scmp.lt.s32.totalorder %s22_s12, %s22_s12 }
  0x1d   :  { %p1326_p11 = scmp.ne.s32.totalorder %s22_s12, %s1325_s1  ;;  %p1331_p13 = scmp.lt.s32.totalorder %s1325_s1, %s1325_s1 }
  0x1f   :  { %p1332_p0 = por %p1331_p13, %p1330_p12 }
  0x21   :  { %p1333_p1 = pnand %p1332_p0, %p1326_p11 }
  0x23   :  { %1336 = shalt.err (!%p1333_p1)
}
  0x24   :  { %24 = dma.hbm_to_vmem [thread:$0]  %s1623_s0, 128, %s22_s12, [#allocation4]  }
  0x25   :  { %s1337_s26 = scalar_lea.hbm %s1625_s2, 512 }
  0x26   :  { %p1338_p2 = scmp.ne.s32.totalorder %s1625_s2, %s1337_s26  ;;  %p1341_p3 = scmp.lt.u32.totalorder %s1337_s26, %s1625_s2 }
  0x28   :  { %p1343_p4 = pnand %p1341_p3, %p1338_p2 }
  0x2a   :  { %1346 = shalt.err (!%p1343_p4)
}
  0x2b   :  { %s1347_s7 = scalar_lea.vmem %s43_s14, 512  ;;  %p1352_p6 = scmp.lt.s32.totalorder %s43_s14, %s43_s14 }
  0x2c   :  { %p1348_p5 = scmp.ne.s32.totalorder %s43_s14, %s1347_s7  ;;  %p1353_p7 = scmp.lt.s32.totalorder %s1347_s7, %s1347_s7 }
  0x2e   :  { %p1354_p8 = por %p1353_p7, %p1352_p6 }
  0x30   :  { %p1355_p9 = pnand %p1354_p8, %p1348_p5 }
  0x32   :  { %1358 = shalt.err (!%p1355_p9)
}
  0x33   :  { %s1416_s0 = smov 128   ;;  %s1417_s8 = smov 8  }
  0x34   :  { %48 = dma.hbm_to_vmem [thread:$0]  %s1625_s2, 512, %s43_s14, [#allocation7], %s1416_s0, %s1416_s0, %s1417_s8  }
  0x35   :  { %s1418_s11 = smov [#allocation9]   ;;  %s1359_s16 = scalar_lea.hbm %s1627_s4, 1024 }
  0x36   :  { %s56_s12 = sshll.u32 %s1418_s11, 4  ;;  %p1360_p10 = scmp.ne.s32.totalorder %s1627_s4, %s1359_s16  ;;  %s57_s12 = int_to_ptr.vmem [resolvable:$true] %s56_s12 }
  0x37   :  { %p1363_p11 = scmp.lt.u32.totalorder %s1359_s16, %s1627_s4 }
  0x39   :  { %p1365_p12 = pnand %p1363_p11, %p1360_p10 }
  0x3b   :  { %1368 = shalt.err (!%p1365_p12)
}
  0x3c   :  { %s1369_s21 = scalar_lea.vmem %s57_s12, 1024  ;;  %p1374_p0 = scmp.lt.s32.totalorder %s57_s12, %s57_s12 }
  0x3d   :  { %p1370_p13 = scmp.ne.s32.totalorder %s57_s12, %s1369_s21  ;;  %p1375_p1 = scmp.lt.s32.totalorder %s1369_s21, %s1369_s21 }
  0x3f   :  { %p1376_p2 = por %p1375_p1, %p1374_p0 }
  0x41   :  { %p1377_p3 = pnand %p1376_p2, %p1370_p13 }
  0x43   :  { %1380 = shalt.err (!%p1377_p3)
}
  0x44   :  { %62 = dma.hbm_to_vmem [thread:$0]  %s1627_s4, 1024, %s57_s12, [#allocation10], %s1416_s0, %s1416_s0, %s1417_s8  }
  0x45   :  { %1403 = dma.done.wait [#allocation4], 128  }
  0x46   :  { %1404 = vsyncadd [#allocation4], 4294967168 }
  0x47   :  { %1405 = dma.done.wait [#allocation7], 1024  }
  0x48   :  { %1406 = vsyncadd [#allocation7], 4294966272 }
  0x49   :  { %1407 = dma.done.wait [#allocation10], 1024  }
  0x4a   :  { %1408 = vsyncadd [#allocation10], 4294966272  ;;  %v1419_v0 = vmov 0.0   ;;  %v79_v1 = vld [vmem:[#allocation6 + $0x8] sm:$0xff]  ;;  %v81_v2 = vld [vmem:[#allocation6 + $0x18] sm:$0xff]  ;;  %vm94_vm0 = vcmask 130048   ;;  %v84_v8 = vlaneseq }
  0x4b   :  { %162 = vmatprep.mubr.f32.mxu1 %v1419_v0  ;;  %v78_v3 = vld [vmem:[#allocation6] sm:$0xff]  ;;  %v1166_v4 = vpack.c.bf16 %v81_v2, %v79_v1  ;;  %v80_v5 = vld [vmem:[#allocation6 + $0x10] sm:$0xff]  ;;  %v77_v7 = vld [vmem:[#allocation3] sm:$0xff]  ;;  %s1420_s22 = smov 64   ;;  %v1421_v30 = vmov 0.0|0.0   ;;  %vm1422_vm1 = vmmov 0  }
  0x4c   :  { %v1168_v6 = vpack.c.bf16 %v80_v5, %v78_v3  ;;  %v85_v9 = vshrl.u32 %v84_v8, 7  ;;  %v82_v11 = vld [vmem:[%s1626_s3] sm:$0x3]  ;;  %v188_v27 = vld [vmem:[#allocation8] sm:$0xff]  ;;  %v190_v29 = vld [vmem:[#allocation8 + $0x10] sm:$0xff]  ;;  %1176 = vmatprep.subr.bf16.mxu0 %v1421_v30  ;;  %1089 = vmatprep.mubr.msk.f32.mxu0 %vm1422_vm1, %v1419_v0  ;;  %s1423_s3 = smov 96  }
  0x4d   :  { %1167 = vmatprep.subr.bf16.mxu1 %v1166_v4  ;;  %v189_v28 = vld [vmem:[#allocation8 + $0x8] sm:$0xff]  ;;  %v191_v32 = vld [vmem:[#allocation8 + $0x18] sm:$0xff]  ;;  %s1424_s23 = smov 32   ;;  %vm196_vm2 = vcmask 261120   ;;  %vm925_vm3 = vcmask 523264   ;;  %s1425_s26 = smov [#allocation11]  }
  0x4e   :  { %1169 = vmatpush1.bf16.msra.mxu1 %v1168_v6  ;;  %v86_v10 = vsub.s32 0, %v85_v9  ;;  %v90_v12 = vsub.s32 1, %v85_v9  ;;  %v1515_v31 = vpack.c.bf16 %v189_v28, %v188_v27  ;;  %v1523_v33 = vpack.c.bf16 %v191_v32, %v190_v29  ;;  %s1006_s27 = sshll.u32 %s1425_s26, 4  ;;  %s1007_s27 = int_to_ptr.vmem [resolvable:$true] %s1006_s27 }
  0x4f   :  { %1170 = vmatprep.subr.bf16.mxu1 %v1421_v30  ;;  %s1381_s28 = scalar_lea.vmem %s1007_s27, 16  ;;  %s1385_s29 = scalar_lea.vmem %s1007_s27, 32 }
  0x50   :  { %v87_v13 = vrot.slane %v82_v11, %v86_v10  ;;  %v91_v14 = vrot.slane %v82_v11, %v90_v12  ;;  %1178 = vmatpush3.bf16.msra.mxu0 %v1515_v31  ;;  %p1382_p4 = scmp.ne.s32.totalorder %s1007_s27, %s1381_s28  ;;  %p1386_p5 = scmp.lt.s32.totalorder %s1007_s27, %s1007_s27 }
  0x51   :  { %1017 = vmatmul.mubr.msk.f32.vlgmr.msra.gmra.mrb[0].mxu1 %vm94_vm0, %v77_v7  ;;  %1179 = vmatprep.subr.bf16.mxu0 %v1421_v30  ;;  %p1387_p6 = scmp.lt.s32.totalorder %s1385_s29, %s1381_s28 }
  0x52   :  { %1078 = vmatprep.mubr.msk.f32.mxu1 %vm1422_vm1, %v1419_v0  ;;  %1172 = vmatpush3.bf16.msra.mxu1 %v1515_v31 }
  0x53   :  { %1173 = vmatprep.subr.bf16.mxu1 %v1421_v30  ;;  %p1388_p7 = por %p1387_p6, %p1386_p5 }
  0x54   :  { %1181 = vmatpush3.bf16.msra.mxu0 %v1523_v33 }
  0x55   :  { %1188 = vmatprep.subr.bf16.mxu0 %v1421_v30  ;;  %p1389_p8 = pnand %p1388_p7, %p1382_p4 }
  0x56   :  { %1175 = vmatpush3.bf16.msra.mxu1 %v1523_v33 }
  0x57   :  { %1182 = vmatprep.subr.bf16.mxu1 %v1421_v30 }
 0x124   :  { %v164_v15 = vpop.f32.mrb[0].mxu1 }
 0x125   :  { %v165_v16 = vadd.f32 %v164_v15, %v87_v13  ;;  %v166_v17 = vpop.f32.mrb[1].mxu1 }
 0x126   :  { %v167_v18 = vadd.f32 %v166_v17, %v91_v14 }
 0x127   :  { %169 = vst [vmem:[#allocation2] sm:$0xff] %v165_v16 }
 0x128   :  { %170 = vst [vmem:[#allocation2 + $0x8] sm:$0xff] %v167_v18 }
 0x12e   :  { %v171_v19 = vld [vmem:[#allocation2] ss:$0 sm:$0xff]  ;;  %v192_v38 = vld [vmem:[#allocation2 + $0x1] ss:$0 sm:$0xff]  ;;  %v296_v57 = vld [vmem:[#allocation2 + $0x2] ss:$0 sm:$0xff] }
 0x12f   :  { %1239 = vtanh.f32 %v171_v19  ;;  %v172_v21 = vmul.f32 0.5, %v171_v19  ;;  %v395_v12 = vld [vmem:[#allocation2 + $0x3] ss:$0 sm:$0xff]  ;;  %v494_v32 = vld [vmem:[#allocation2 + $0x4] ss:$0 sm:$0xff] }
 0x131   :  { %1241 = vtanh.f32 %v172_v21 }
 0x139   :  { %v1240_v20 = vpop.eup %1239 }
 0x13a   :  { %178 = vrot.lane.b32.xlu0 %v1240_v20, %s1420_s22 }
 0x13b   :  { %v1242_v22 = vpop.eup %1241 }
 0x13c   :  { %v174_v23 = vmul.f32 0.5, %v1242_v22 }
 0x13e   :  { %v175_v24 = vadd.f32 0.5, %v174_v23 }
 0x1ac   :  { %v179_v25 = vpop.permute.xlu0 %178 }
 0x1ad   :  { %v181_v26 = vmul.f32 %v179_v25, %v175_v24 }
 0x1af   :  { %1243 = vtanh.f32 %v181_v26 }
 0x1b9   :  { %v1244_v34 = vpop.eup %1243 }
 0x1ba   :  { %184 = vrot.lane.b32.xlu0 %v1244_v34, %s1423_s3 }
 0x1be   :  { %276 = vrot.lane.b32.xlu0 %v181_v26, %s1424_s23 }
 0x22c   :  { %v185_v35 = vpop.permute.xlu0 %184 }
 0x22d   :  { %v187_v36 = vmul.f32 %v185_v35, %v175_v24 }
 0x22f   :  { %194 = vrot.lane.b32.xlu1 %v187_v36, %s1424_s23 }
 0x230   :  { %v277_v49 = vpop.permute.xlu0 %276 }
 0x2a1   :  { %v195_v37 = vpop.permute.xlu1 %194 }
 0x2a2   :  { %1079 = vmatmul.mubr.msk.f32.vlgmr.msra.gmra.mrb[2].mxu1 %vm196_vm2, %v195_v37 }
 0x2a3   :  { %1184 = vmatpush3.bf16.msra.mxu1 %v1515_v31  ;;  %1100 = vmatprep.mubr.msk.f32.mxu1 %vm1422_vm1, %v1419_v0 }
 0x2a4   :  { %1185 = vmatprep.subr.bf16.mxu1 %v1421_v30 }
 0x2a7   :  { %1187 = vmatpush3.bf16.msra.mxu1 %v1523_v33 }
 0x2a8   :  { %1194 = vmatprep.subr.bf16.mxu1 %v1421_v30 }
 0x375   :  { %v265_v39 = vpop.f32.mrb[2].mxu1 }
 0x376   :  { %v269_v40 = vadd.f32 %v265_v39, %v192_v38  ;;  %v1080_v41 = vpop.f32.mrb[3].mxu1 }
 0x378   :  { %1245 = vtanh.f32 %v269_v40  ;;  %v270_v43 = vmul.f32 0.5, %v269_v40 }
 0x37a   :  { %1247 = vtanh.f32 %v270_v43 }
 0x382   :  { %v1246_v42 = vpop.eup %1245 }
 0x383   :  { %281 = vrot.lane.b32.xlu1 %v1246_v42, %s1420_s22 }
 0x384   :  { %v1248_v44 = vpop.eup %1247 }
 0x385   :  { %v272_v45 = vmul.f32 0.5, %v1248_v44 }
 0x387   :  { %v273_v46 = vadd.f32 0.5, %v272_v45 }
 0x389   :  { %v279_v50 = vmul.f32 %v277_v49, %v273_v46 }
 0x3f5   :  { %v282_v47 = vpop.permute.xlu1 %281 }
 0x3f6   :  { %v284_v48 = vmul.f32 %v282_v47, %v273_v46 }
 0x3f8   :  { %286 = vrot.lane.b32.xlu1 %v284_v48, %s1424_s23 }
 0x46a   :  { %v287_v51 = vpop.permute.xlu1 %286 }
 0x46b   :  { %v289_v52 = vadd.f32 %v287_v51, %v279_v50  ;;  %v593_v51 = vld [vmem:[#allocation2 + $0x5] ss:$0 sm:$0xff] }
 0x46d   :  { %1249 = vtanh.f32 %v289_v52 }
 0x477   :  { %v1250_v53 = vpop.eup %1249 }
 0x478   :  { %292 = vrot.lane.b32.xlu0 %v1250_v53, %s1420_s22 }
 0x4ea   :  { %v293_v54 = vpop.permute.xlu0 %292 }
 0x4eb   :  { %v295_v55 = vmul.f32 %v293_v54, %v273_v46 }
 0x4ed   :  { %298 = vrot.lane.b32.xlu1 %v295_v55, %s1424_s23 }
 0x55f   :  { %v299_v56 = vpop.permute.xlu1 %298 }
 0x560   :  { %1090 = vmatmul.mubr.msk.f32.vlgmr.msra.gmra.mrb[0].mxu0 %vm196_vm2, %v299_v56 }
 0x561   :  { %1190 = vmatpush3.bf16.msra.mxu0 %v1515_v31  ;;  %1111 = vmatprep.mubr.msk.f32.mxu0 %vm1422_vm1, %v1419_v0 }
 0x562   :  { %1191 = vmatprep.subr.bf16.mxu0 %v1421_v30 }
 0x565   :  { %1193 = vmatpush3.bf16.msra.mxu0 %v1523_v33 }
 0x566   :  { %1200 = vmatprep.subr.bf16.mxu0 %v1421_v30 }
 0x633   :  { %v368_v58 = vpop.f32.mrb[0].mxu0 }
 0x634   :  { %v372_v59 = vadd.f32 %v368_v58, %v296_v57  ;;  %v1091_v60 = vpop.f32.mrb[1].mxu0 }
 0x636   :  { %1251 = vtanh.f32 %v372_v59  ;;  %v373_v62 = vmul.f32 0.5, %v372_v59 }
 0x638   :  { %1253 = vtanh.f32 %v373_v62 }
 0x640   :  { %v1252_v61 = vpop.eup %1251 }
 0x641   :  { %380 = vrot.lane.b32.xlu0 %v1252_v61, %s1420_s22 }
 0x642   :  { %v1254_v63 = vpop.eup %1253 }
 0x643   :  { %v375_v1 = vmul.f32 0.5, %v1254_v63 }
 0x645   :  { %v376_v2 = vadd.f32 0.5, %v375_v1 }
 0x647   :  { %v378_v5 = vmul.f32 %v376_v2, %v289_v52 }
 0x6b3   :  { %v381_v3 = vpop.permute.xlu0 %380 }
 0x6b4   :  { %v383_v4 = vmul.f32 %v381_v3, %v376_v2 }
 0x6b6   :  { %385 = vrot.lane.b32.xlu1 %v383_v4, %s1424_s23  ;;  %v692_v4 = vld [vmem:[#allocation2 + $0x6] ss:$0 sm:$0xff] }
 0x728   :  { %v386_v6 = vpop.permute.xlu1 %385 }
 0x729   :  { %v388_v7 = vadd.f32 %v386_v6, %v378_v5 }
 0x72b   :  { %1255 = vtanh.f32 %v388_v7 }
 0x735   :  { %v1256_v8 = vpop.eup %1255 }
 0x736   :  { %391 = vrot.lane.b32.xlu0 %v1256_v8, %s1420_s22 }
 0x7a8   :  { %v392_v9 = vpop.permute.xlu0 %391 }
 0x7a9   :  { %v394_v10 = vmul.f32 %v392_v9, %v376_v2 }
 0x7ab   :  { %397 = vrot.lane.b32.xlu1 %v394_v10, %s1424_s23 }
 0x81d   :  { %v398_v11 = vpop.permute.xlu1 %397 }
 0x81e   :  { %1101 = vmatmul.mubr.msk.f32.vlgmr.msra.gmra.mrb[4].mxu1 %vm196_vm2, %v398_v11 }
 0x81f   :  { %1196 = vmatpush3.bf16.msra.mxu1 %v1515_v31  ;;  %1122 = vmatprep.mubr.msk.f32.mxu1 %vm1422_vm1, %v1419_v0 }
 0x820   :  { %1197 = vmatprep.subr.bf16.mxu1 %v1421_v30 }
 0x823   :  { %1199 = vmatpush3.bf16.msra.mxu1 %v1523_v33 }
 0x824   :  { %1206 = vmatprep.subr.bf16.mxu1 %v1421_v30 }
 0x8f1   :  { %v467_v13 = vpop.f32.mrb[4].mxu1 }
 0x8f2   :  { %v471_v14 = vadd.f32 %v467_v13, %v395_v12  ;;  %v1102_v15 = vpop.f32.mrb[5].mxu1 }
 0x8f4   :  { %1257 = vtanh.f32 %v471_v14  ;;  %v472_v17 = vmul.f32 0.5, %v471_v14 }
 0x8f6   :  { %1259 = vtanh.f32 %v472_v17 }
 0x8fe   :  { %v1258_v16 = vpop.eup %1257 }
 0x8ff   :  { %479 = vrot.lane.b32.xlu0 %v1258_v16, %s1420_s22 }
 0x900   :  { %v1260_v18 = vpop.eup %1259 }
 0x901   :  { %v474_v19 = vmul.f32 0.5, %v1260_v18 }
 0x903   :  { %v475_v20 = vadd.f32 0.5, %v474_v19 }
 0x905   :  { %v477_v23 = vmul.f32 %v475_v20, %v388_v7 }
 0x971   :  { %v480_v21 = vpop.permute.xlu0 %479 }
 0x972   :  { %v482_v22 = vmul.f32 %v480_v21, %v475_v20  ;;  %v791_v21 = vld [vmem:[#allocation2 + $0x7] ss:$0 sm:$0xff] }
 0x974   :  { %484 = vrot.lane.b32.xlu1 %v482_v22, %s1424_s23 }
 0x9e6   :  { %v485_v24 = vpop.permute.xlu1 %484 }
 0x9e7   :  { %v487_v25 = vadd.f32 %v485_v24, %v477_v23 }
 0x9e9   :  { %1261 = vtanh.f32 %v487_v25 }
 0x9f3   :  { %v1262_v26 = vpop.eup %1261 }
 0x9f4   :  { %490 = vrot.lane.b32.xlu0 %v1262_v26, %s1420_s22 }
 0xa66   :  { %v491_v27 = vpop.permute.xlu0 %490 }
 0xa67   :  { %v493_v28 = vmul.f32 %v491_v27, %v475_v20 }
 0xa69   :  { %496 = vrot.lane.b32.xlu1 %v493_v28, %s1424_s23 }
 0xadb   :  { %v497_v29 = vpop.permute.xlu1 %496 }
 0xadc   :  { %1112 = vmatmul.mubr.msk.f32.vlgmr.msra.gmra.mrb[2].mxu0 %vm196_vm2, %v497_v29 }
 0xadd   :  { %1202 = vmatpush3.bf16.msra.mxu0 %v1515_v31  ;;  %1133 = vmatprep.mubr.msk.f32.mxu0 %vm1422_vm1, %v1419_v0 }
 0xade   :  { %1203 = vmatprep.subr.bf16.mxu0 %v1421_v30 }
 0xae1   :  { %1205 = vmatpush3.bf16.msra.mxu0 %v1523_v33 }
 0xae2   :  { %1212 = vmatprep.subr.bf16.mxu0 %v1421_v30 }
 0xbaf   :  { %v566_v34 = vpop.f32.mrb[2].mxu0 }
 0xbb0   :  { %v570_v35 = vadd.f32 %v566_v34, %v494_v32  ;;  %v1113_v36 = vpop.f32.mrb[3].mxu0 }
 0xbb2   :  { %1263 = vtanh.f32 %v570_v35  ;;  %v571_v38 = vmul.f32 0.5, %v570_v35 }
 0xbb4   :  { %1265 = vtanh.f32 %v571_v38 }
 0xbbc   :  { %v1264_v37 = vpop.eup %1263 }
 0xbbd   :  { %578 = vrot.lane.b32.xlu0 %v1264_v37, %s1420_s22 }
 0xbbe   :  { %v1266_v39 = vpop.eup %1265 }
 0xbbf   :  { %v573_v40 = vmul.f32 0.5, %v1266_v39 }
 0xbc1   :  { %v574_v41 = vadd.f32 0.5, %v573_v40 }
 0xbc3   :  { %v576_v44 = vmul.f32 %v574_v41, %v487_v25  ;;  %v890_v25 = vld [vmem:[#allocation2 + $0xf] ss:$0 sm:$0xff] }
 0xbc4   :  { %v891_v29 = vmul.f32 0.5, %v890_v25 }
 0xc2f   :  { %v579_v42 = vpop.permute.xlu0 %578 }
 0xc30   :  { %v581_v43 = vmul.f32 %v579_v42, %v574_v41 }
 0xc32   :  { %583 = vrot.lane.b32.xlu1 %v581_v43, %s1424_s23 }
 0xca4   :  { %v584_v45 = vpop.permute.xlu1 %583 }
 0xca5   :  { %v586_v46 = vadd.f32 %v584_v45, %v576_v44 }
 0xca7   :  { %1267 = vtanh.f32 %v586_v46 }
 0xcb1   :  { %v1268_v47 = vpop.eup %1267 }
 0xcb2   :  { %589 = vrot.lane.b32.xlu0 %v1268_v47, %s1420_s22  ;;  %v916_v47 = vld [vmem:[#allocation9] sm:$0xff] }
 0xd24   :  { %v590_v48 = vpop.permute.xlu0 %589 }
 0xd25   :  { %v592_v49 = vmul.f32 %v590_v48, %v574_v41  ;;  %v917_v48 = vld [vmem:[#allocation9 + $0x8] sm:$0xff] }
 0xd27   :  { %595 = vrot.lane.b32.xlu1 %v592_v49, %s1424_s23  ;;  %v918_v49 = vld [vmem:[#allocation9 + $0x10] sm:$0xff] }
 0xd99   :  { %v596_v50 = vpop.permute.xlu1 %595 }
 0xd9a   :  { %1123 = vmatmul.mubr.msk.f32.vlgmr.msra.gmra.mrb[6].mxu1 %vm196_vm2, %v596_v50  ;;  %v1213_v50 = vpack.c.bf16 %v917_v48, %v916_v47 }
 0xd9b   :  { %1208 = vmatpush3.bf16.msra.mxu1 %v1515_v31  ;;  %1144 = vmatprep.mubr.msk.f32.mxu1 %vm1422_vm1, %v1419_v0 }
 0xd9c   :  { %1209 = vmatprep.subr.bf16.mxu1 %v1421_v30 }
 0xd9f   :  { %1211 = vmatpush3.bf16.msra.mxu1 %v1523_v33 }
 0xe6d   :  { %v665_v52 = vpop.f32.mrb[6].mxu1 }
 0xe6e   :  { %v669_v53 = vadd.f32 %v665_v52, %v593_v51  ;;  %v1124_v54 = vpop.f32.mrb[7].mxu1  ;;  %v919_v51 = vld [vmem:[#allocation9 + $0x18] sm:$0xff] }
 0xe6f   :  { %v1216_v52 = vpack.c.bf16 %v919_v51, %v918_v49  ;;  %v921_v54 = vld [vmem:[#allocation9 + $0x28] sm:$0xff] }
 0xe70   :  { %1269 = vtanh.f32 %v669_v53  ;;  %v670_v56 = vmul.f32 0.5, %v669_v53  ;;  %v920_v53 = vld [vmem:[#allocation9 + $0x20] sm:$0xff] }
 0xe72   :  { %1271 = vtanh.f32 %v670_v56  ;;  %v922_v56 = vld [vmem:[#allocation9 + $0x30] sm:$0xff] }
 0xe7a   :  { %v1270_v55 = vpop.eup %1269 }
 0xe7b   :  { %677 = vrot.lane.b32.xlu0 %v1270_v55, %s1420_s22  ;;  %v1219_v55 = vpack.c.bf16 %v921_v54, %v920_v53 }
 0xe7c   :  { %v1272_v57 = vpop.eup %1271 }
 0xe7d   :  { %v672_v58 = vmul.f32 0.5, %v1272_v57  ;;  %v923_v57 = vld [vmem:[#allocation9 + $0x38] sm:$0xff] }
 0xe7f   :  { %v673_v31 = vadd.f32 0.5, %v672_v58 }
 0xe81   :  { %v675_v61 = vmul.f32 %v673_v31, %v586_v46 }
 0xeed   :  { %v678_v59 = vpop.permute.xlu0 %677 }
 0xeee   :  { %v680_v60 = vmul.f32 %v678_v59, %v673_v31  ;;  %v1222_v59 = vpack.c.bf16 %v923_v57, %v922_v56 }
 0xef0   :  { %682 = vrot.lane.b32.xlu1 %v680_v60, %s1424_s23 }
 0xf62   :  { %v683_v62 = vpop.permute.xlu1 %682 }
 0xf63   :  { %v685_v33 = vadd.f32 %v683_v62, %v675_v61 }
 0xf65   :  { %1273 = vtanh.f32 %v685_v33 }
 0xf6f   :  { %v1274_v63 = vpop.eup %1273 }
 0xf70   :  { %688 = vrot.lane.b32.xlu0 %v1274_v63, %s1420_s22 }
 0xfe2   :  { %v689_v1 = vpop.permute.xlu0 %688 }
 0xfe3   :  { %v691_v2 = vmul.f32 %v689_v1, %v673_v31 }
 0xfe5   :  { %694 = vrot.lane.b32.xlu1 %v691_v2, %s1424_s23  ;;  %v924_v2 = vld [vmem:[%s1628_s5] sm:$0x1] }
0x1057   :  { %v695_v3 = vpop.permute.xlu1 %694 }
0x1058   :  { %1134 = vmatmul.mubr.msk.f32.vlgmr.msra.gmra.mrb[4].mxu0 %vm196_vm2, %v695_v3 }
0x1059   :  { %1163 = vmatprep.mubr.msk.f32.mxu0 %vm1422_vm1, %v1419_v0  ;;  %1214 = vmatpush3.bf16.msra.mxu0 %v1213_v50 }
0x105a   :  { %1215 = vmatprep.subr.bf16.mxu0 %v1421_v30 }
0x105d   :  { %1217 = vmatpush3.bf16.msra.mxu0 %v1216_v52 }
0x105e   :  { %1218 = vmatprep.subr.bf16.mxu0 %v1421_v30 }
0x1061   :  { %1220 = vmatpush3.bf16.msra.mxu0 %v1219_v55 }
0x1062   :  { %1221 = vmatprep.subr.bf16.mxu0 %v1421_v30 }
0x1065   :  { %1223 = vmatpush3.bf16.msra.mxu0 %v1222_v59 }
0x112b   :  { %v764_v5 = vpop.f32.mrb[4].mxu0 }
0x112c   :  { %v768_v6 = vadd.f32 %v764_v5, %v692_v4  ;;  %v1135_v7 = vpop.f32.mrb[5].mxu0 }
0x112e   :  { %1275 = vtanh.f32 %v768_v6  ;;  %v769_v9 = vmul.f32 0.5, %v768_v6 }
0x1130   :  { %1277 = vtanh.f32 %v769_v9 }
0x1138   :  { %v1276_v8 = vpop.eup %1275 }
0x1139   :  { %776 = vrot.lane.b32.xlu0 %v1276_v8, %s1420_s22 }
0x113a   :  { %v1278_v10 = vpop.eup %1277 }
0x113b   :  { %v771_v11 = vmul.f32 0.5, %v1278_v10 }
0x113d   :  { %v772_v12 = vadd.f32 0.5, %v771_v11 }
0x113f   :  { %v774_v15 = vmul.f32 %v772_v12, %v685_v33 }
0x11ab   :  { %v777_v13 = vpop.permute.xlu0 %776 }
0x11ac   :  { %v779_v14 = vmul.f32 %v777_v13, %v772_v12 }
0x11ae   :  { %781 = vrot.lane.b32.xlu1 %v779_v14, %s1424_s23 }
0x1220   :  { %v782_v16 = vpop.permute.xlu1 %781 }
0x1221   :  { %v784_v0 = vadd.f32 %v782_v16, %v774_v15 }
0x1223   :  { %1279 = vtanh.f32 %v784_v0 }
0x122d   :  { %v1280_v17 = vpop.eup %1279 }
0x122e   :  { %787 = vrot.lane.b32.xlu0 %v1280_v17, %s1420_s22 }
0x12a0   :  { %v788_v18 = vpop.permute.xlu0 %787 }
0x12a1   :  { %v790_v19 = vmul.f32 %v788_v18, %v772_v12 }
0x12a3   :  { %793 = vrot.lane.b32.xlu1 %v790_v19, %s1424_s23 }
0x1315   :  { %v794_v20 = vpop.permute.xlu1 %793 }
0x1316   :  { %1145 = vmatmul.mubr.msk.f32.vlgmr.msra.gmra.mrb[8].mxu1 %vm196_vm2, %v794_v20 }
0x13e9   :  { %v863_v22 = vpop.f32.mrb[8].mxu1 }
0x13ea   :  { %v867_v23 = vadd.f32 %v863_v22, %v791_v21  ;;  %v1146_v24 = vpop.f32.mrb[9].mxu1 }
0x13ec   :  { %1281 = vtanh.f32 %v867_v23  ;;  %v868_v28 = vmul.f32 0.5, %v867_v23 }
0x13ed   :  { %1283 = vtanh.f32 %v890_v25 }
0x13ee   :  { %1285 = vtanh.f32 %v868_v28 }
0x13ef   :  { %1287 = vtanh.f32 %v891_v29 }
0x13f6   :  { %v1282_v26 = vpop.eup %1281 }
0x13f7   :  { %875 = vrot.lane.b32.xlu0 %v1282_v26, %s1420_s22  ;;  %v1284_v27 = vpop.eup %1283 }
0x13f8   :  { %v1286_v32 = vpop.eup %1285 }
0x13f9   :  { %v870_v34 = vmul.f32 0.5, %v1286_v32  ;;  %v1288_v35 = vpop.eup %1287 }
0x13fa   :  { %v893_v37 = vmul.f32 0.5, %v1288_v35 }
0x13fb   :  { %897 = vrot.lane.b32.xlu0 %v1284_v27, %s1420_s22  ;;  %v871_v36 = vadd.f32 0.5, %v870_v34 }
0x13fc   :  { %v894_v40 = vadd.f32 0.5, %v893_v37 }
0x13fd   :  { %v873_v44 = vmul.f32 %v871_v36, %v784_v0 }
0x1469   :  { %v876_v38 = vpop.permute.xlu0 %875 }
0x146a   :  { %v878_v39 = vmul.f32 %v876_v38, %v871_v36 }
0x146c   :  { %880 = vrot.lane.b32.xlu1 %v878_v39, %s1424_s23 }
0x146d   :  { %v898_v41 = vpop.permute.xlu0 %897 }
0x146e   :  { %v900_v42 = vmul.f32 %v898_v41, %v894_v40 }
0x1470   :  { %1289 = vtanh.f32 %v900_v42 }
0x147a   :  { %v1290_v43 = vpop.eup %1289 }
0x147b   :  { %903 = vrot.lane.b32.xlu0 %v1290_v43, %s1423_s3 }
0x14de   :  { %v881_v45 = vpop.permute.xlu1 %880 }
0x14df   :  { %v883_v46 = vadd.f32 %v881_v45, %v873_v44 }
0x14e1   :  { %1291 = vtanh.f32 %v883_v46 }
0x14eb   :  { %v1292_v58 = vpop.eup %1291 }
0x14ec   :  { %886 = vrot.lane.b32.xlu1 %v1292_v58, %s1420_s22 }
0x14ed   :  { %v904_v31 = vpop.permute.xlu0 %903 }
0x14ee   :  { %v906_v60 = vmul.f32 %v904_v31, %v894_v40 }
0x14f0   :  { %912 = vrot.lane.b32.xlu0 %v906_v60, %s1420_s22 }
0x155e   :  { %v887_v61 = vpop.permute.xlu1 %886 }
0x155f   :  { %v889_v62 = vmul.f32 %v887_v61, %v871_v36 }
0x1561   :  { %908 = vrot.lane.b32.xlu1 %v889_v62, %s1424_s23 }
0x1562   :  { %v913_v33 = vpop.permute.xlu0 %912 }
0x15d3   :  { %v909_v63 = vpop.permute.xlu1 %908 }
0x15d4   :  { %v915_v1 = vsel %vm196_vm2, %v909_v63, %v913_v33 }
0x15d5   :  { %1164 = vmatmul.mubr.msk.f32.vlgmr.msra.gmra.mrb[6].mxu0 %vm925_vm3, %v915_v1 }
0x16a8   :  { %v995_v30 = vpop.f32.mrb[6].mxu0 }
0x16a9   :  { %v996_v3 = vadd.f32 %v995_v30, %v924_v2  ;;  %v1165_v4 = vpop.f32.mrb[7].mxu0 }
0x16ab   :  { %999 = vst [vmem:[#allocation11] sm:$0x1] %v996_v3 }
0x16ac   :  { %1392 = shalt.err (!%p1389_p8)
}
0x16ad   :  { %s1393_s0 = scalar_lea.hbm %s1629_s6, 16 }
0x16ae   :  { %p1394_p9 = scmp.ne.s32.totalorder %s1629_s6, %s1393_s0  ;;  %p1397_p10 = scmp.lt.u32.totalorder %s1393_s0, %s1629_s6 }
0x16b0   :  { %p1399_p11 = pnand %p1397_p10, %p1394_p9 }
0x16b2   :  { %1402 = shalt.err (!%p1399_p11)
}
0x16b3   :  { %1009 = dma.vmem_to_hbm [thread:$0]  %s1007_s27, 16, %s1629_s6, [#allocation5]  }
0x16b4   :  { %1409 = dma.done.wait [#allocation5], 16  }
0x16b5   :  { %1410 = vsyncadd [#allocation5], 4294967280 }
0x16b6   :  { %1013 = vsyncpa [#allocation4], 1 }
0x16b7   :  { %1014 = vsyncpa [#allocation7], 1 }
0x16b8   :  { %1015 = vsyncpa [#allocation10], 1 }
0x16b9   :  { %1016 = vsyncpa [#allocation5], 1 }

</bundles_post_ra>
